<compile_context>
chip_gen: v6e
topology: v6e:2x2x1
jax: 0.10.0
libtpu: 0.0.40
codegen_flags: <defaults>
</compile_context>

<pallas_src>
import jax
import jax.numpy as jnp
from jax.experimental import pallas as pl
from jax.experimental.pallas import tpu as pltpu


def _round_up(x, m):
    return ((x + m - 1) // m) * m


def _vmem_capacity_bytes():
    """Physical VMEM of the local chip; conservative default if unqueryable."""
    try:
        return int(pltpu.get_tpu_info().vmem_capacity_bytes)
    except Exception:
        return 64 * 1024 * 1024   # v7x per-TensorCore VMEM (smallest of the fleet)


def arc_adapter_kernel(x_ref, down_ref, up_ref, bias_ref, o_ref):
    """One (TM, H) token tile: out = (x @ down_scaled) @ up + bias + x."""
    x = x_ref[...]                                              # (TM, H)
    # First matmul on the MXU, f32 accumulation: (TM, H) @ (H, A) -> (TM, A).
    a = jnp.dot(x, down_ref[...], preferred_element_type=jnp.float32)
    # Dropout(p=0.0) / eval mode is the identity — nothing to do.
    # Feed the second matmul in the I/O dtype (single-pass MXU when bf16;
    # exact no-op when f32).
    a = a.astype(x_ref.dtype)
    # Second matmul, f32 accumulation: (TM, A) @ (A, H) -> (TM, H).
    out = jnp.dot(a, up_ref[...], preferred_element_type=jnp.float32)
    # Bias + residual in f32, single final cast.
    o_ref[...] = (out + bias_ref[...] + x.astype(jnp.float32)).astype(o_ref.dtype)


def _derive_tile_m(M, H, A_pad, itemsize, sub, vmem_capacity, tile_m):
    """Capacity-aware token-tile size (rows), dtype-aware sublane aligned."""
    if tile_m is not None:
        TM = max(sub, _round_up(tile_m, sub))
    else:
        budget = (vmem_capacity * 85) // 100
        # Resident (single-buffered) weights + bias.
        resident = 2 * H * A_pad * itemsize + H * 4
        # Per-row streaming cost: x + out double-buffered, f32 temporaries for
        # the residual/bias add, (TM, A_pad) intermediate (f32 + cast copy).
        per_row = 4 * H * itemsize + 2 * H * 4 + A_pad * (4 + itemsize)
        avail = max(budget - resident, per_row * sub)
        TM = max(sub, (avail // per_row) // sub * sub)
        TM = min(TM, 2048)            # diminishing returns past ~2k rows/tile
    # Never tile beyond the (sublane-rounded) token count.
    TM = min(TM, max(sub, _round_up(M, sub)))
    return TM


def arc_adapter_forward(x, down_projection, up_projection, adapter_rescale,
                        adapter_bias, *, tile_m=None):
    """x: (..., H); down: (H, A); up: (A, H); rescale: (1, A); bias: (H,)."""
    orig_shape = x.shape
    H = orig_shape[-1]
    A = down_projection.shape[-1]
    out_dtype = x.dtype
    itemsize = jnp.dtype(x.dtype).itemsize
    sub = max(8, 32 // itemsize)                 # sublane multiple: 8/16/32

    # ---- parameter prep (once, outside the per-tile grid loop) --------------
    # Fold adapter_rescale into the down projection so the (H, A) elementwise
    # multiply is not re-executed on every grid step.
    down_scaled = (down_projection * adapter_rescale).astype(x.dtype)
    up = up_projection.astype(x.dtype)
    bias2d = adapter_bias.reshape(1, H).astype(jnp.float32)

    # Zero-pad the adapter dim to a lane-dense multiple of 128 (math unchanged).
    A_pad = _round_up(A, 128)
    if A_pad != A:
        down_scaled = jnp.pad(down_scaled, ((0, 0), (0, A_pad - A)))
        up = jnp.pad(up, ((0, A_pad - A), (0, 0)))

    # ---- token-dim tiling (no padding of x; Pallas masks the boundary) ------
    x2d = x.reshape(-1, H)                                      # (M, H)
    M = x2d.shape[0]
    vmem_capacity = _vmem_capacity_bytes()
    TM = _derive_tile_m(M, H, A_pad, itemsize, sub, vmem_capacity, tile_m)
    grid_m = pl.cdiv(M, TM)
    # Balance the two v7x TensorCores: prefer an even grid when grid_m > 1.
    if grid_m > 1 and grid_m % 2 == 1:
        TM_even = max(sub, _round_up(pl.cdiv(M, grid_m + 1), sub))
        if pl.cdiv(M, TM_even) % 2 == 0:
            TM = TM_even
            grid_m = pl.cdiv(M, TM)

    # ---- explicit VMEM budget & cost hint ------------------------------------
    resident_bytes = 2 * H * A_pad * itemsize + H * 4           # single-buffered
    stream_bytes = 2 * 2 * TM * H * itemsize                    # x + out, 2 bufs each
    scratch_bytes = TM * A_pad * (4 + itemsize) + 2 * TM * H * 4
    vmem_est = resident_bytes + stream_bytes + scratch_bytes
    vmem_limit = int(min((vmem_capacity * 9) // 10,
                         max(vmem_est * 3 // 2, 32 * 1024 * 1024)))
    vmem_limit = max(vmem_limit, min(vmem_est, (vmem_capacity * 9) // 10))

    cost = pl.CostEstimate(
        flops=4 * M * H * A_pad,
        transcendentals=0,
        bytes_accessed=(2 * M * H * itemsize            # read x + write out
                        + 2 * H * A_pad * itemsize      # down + up weights
                        + H * 4),                       # bias
    )

    def _resident_spec(block_shape, index_map, single_buffer):
        if single_buffer:
            # Constant index_map -> never re-fetched; a second buffer is dead VMEM.
            return pl.BlockSpec(block_shape, index_map,
                                pipeline_mode=pl.Buffered(1))
        return pl.BlockSpec(block_shape, index_map)

    def _run(single_buffer):
        in_specs = [
            pl.BlockSpec((TM, H), lambda i: (i, 0)),                      # x tile
            _resident_spec((H, A_pad), lambda i: (0, 0), single_buffer),  # down*rescale
            _resident_spec((A_pad, H), lambda i: (0, 0), single_buffer),  # up
            _resident_spec((1, H), lambda i: (0, 0), single_buffer),      # bias
        ]
        return pl.pallas_call(
            arc_adapter_kernel,
            out_shape=jax.ShapeDtypeStruct((M, H), out_dtype),
            grid=(grid_m,),
            in_specs=in_specs,
            out_specs=pl.BlockSpec((TM, H), lambda i: (i, 0)),   # lane-dense, full-H
            compiler_params=pltpu.CompilerParams(
                dimension_semantics=("parallel",),               # megacore on v7x
                vmem_limit_bytes=vmem_limit,
            ),
            cost_estimate=cost,
        )(x2d, down_scaled, up, bias2d)

    try:
        out2d = _run(True)
    except Exception:
        # Fallback for toolchains where Buffered(1) on resident operands is rejected.
        out2d = _run(False)

    return out2d.reshape(orig_shape)


def init_arc_adapter_params(adapter_dim, hidden_dim, position='att', key=None):
    """Deterministic parameter init mirroring the PyTorch __init__."""
    if position == 'att':
        adapter_rescale = jnp.zeros((1, adapter_dim), dtype=jnp.float32)
    else:
        # xavier_uniform_ on a (1, adapter_dim) tensor: bound = sqrt(6/(fan_in+fan_out))
        bound = (6.0 / (adapter_dim + 1)) ** 0.5
        adapter_rescale = jax.random.uniform(
            key, (1, adapter_dim), minval=-bound, maxval=bound, dtype=jnp.float32)
    adapter_bias = jnp.zeros((hidden_dim,), dtype=jnp.float32)
    return adapter_rescale, adapter_bias


def _reference(x, down, up, rescale, bias):
    H = x.shape[-1]
    x2d = x.reshape(-1, H).astype(jnp.float32)
    d = down.astype(jnp.float32) * rescale.astype(jnp.float32)
    ref = (x2d @ d) @ up.astype(jnp.float32) + bias.reshape(1, H).astype(jnp.float32) + x2d
    return ref.reshape(x.shape)


if __name__ == "__main__":
    # TODO(synk): nn.Dropout with p>0 (training mode) is not implemented in the
    # kernel; p=0.0 / eval-mode dropout is the identity, which matches the spec.

    key = jax.random.PRNGKey(0)
    kx, kd, ku, kr, kx2 = jax.random.split(key, 5)

    # --- small shape check (single grid step) --------------------------------
    B, S, H, A = 2, 8, 32, 16   # batch, seq, hidden_dim, adapter_dim
    x = jax.random.normal(kx, (B, S, H), dtype=jnp.float32)
    down_projection = jax.random.normal(kd, (H, A), dtype=jnp.float32) * 0.1
    up_projection = jax.random.normal(ku, (A, H), dtype=jnp.float32) * 0.1
    # position='ffn' (xavier init) so the adapter path is non-trivial;
    # position='att' would zero adapter_rescale making output == x + bias.
    adapter_rescale, adapter_bias = init_arc_adapter_params(
        A, H, position='ffn', key=kr)

    out = arc_adapter_forward(x, down_projection, up_projection,
                              adapter_rescale, adapter_bias)
    out = jax.block_until_ready(out)
    ref = _reference(x, down_projection, up_projection,
                     adapter_rescale, adapter_bias)
    assert jnp.allclose(out, ref, atol=1e-5, rtol=1e-5), "mismatch vs reference (small)"

    # --- multi-tile check: grid > 1 with M % TM != 0 (boundary masking path) --
    B2, S2, H2 = 2, 200, 128    # M = 400, tile_m=128 -> grid = 4, last block partial
    x_big = jax.random.normal(kx2, (B2, S2, H2), dtype=jnp.float32)
    down2 = jax.random.normal(kd, (H2, A), dtype=jnp.float32) * 0.1
    up2 = jax.random.normal(ku, (A, H2), dtype=jnp.float32) * 0.1
    rescale2, bias2 = init_arc_adapter_params(A, H2, position='ffn', key=kr)

    out_big = arc_adapter_forward(x_big, down2, up2, rescale2, bias2, tile_m=128)
    out_big = jax.block_until_ready(out_big)
    ref_big = _reference(x_big, down2, up2, rescale2, bias2)
    assert jnp.allclose(out_big, ref_big, atol=1e-4, rtol=1e-4), "mismatch vs reference (tiled)"

    # --- bf16 I/O smoke test (production path: halves (M, H) HBM traffic) ----
    x_bf = x_big.astype(jnp.bfloat16)
    down_bf = down2.astype(jnp.bfloat16)
    up_bf = up2.astype(jnp.bfloat16)
    out_bf = arc_adapter_forward(x_bf, down_bf, up_bf, rescale2, bias2, tile_m=128)
    out_bf = jax.block_until_ready(out_bf)
    ref_bf = _reference(x_bf, down_bf, up_bf, rescale2, bias2)
    assert jnp.allclose(out_bf.astype(jnp.float32), ref_bf, atol=1e-1, rtol=5e-2), \
        "mismatch vs reference (bf16)"

    print("KERNEL_OK")
</pallas_src>

<mosaic_0001>
module attributes {stable_mosaic.version = 11 : i64} {
  func.func @arc_adapter_kernel(%arg0: i32, %arg1: memref<16x32xf32, #tpu.memory_space<vmem>>, %arg2: memref<32x128xf32, #tpu.memory_space<vmem>>, %arg3: memref<128x32xf32, #tpu.memory_space<vmem>>, %arg4: memref<1x32xf32, #tpu.memory_space<vmem>>, %arg5: memref<16x32xf32, #tpu.memory_space<vmem>>) attributes {dimension_semantics = [#tpu.dimension_semantics<parallel>], iteration_bounds = array<i64: 1>, scalar_prefetch = 0 : i64, scratch_operands = 0 : i64, tpu.core_type = #tpu.core_type<tc>, window_params = [{transform_indices = @transform_0, window_bounds = array<i64: 16, 32>}, {pipeline_mode = #tpu.pipeline_mode<synchronous>, transform_indices = @transform_1, window_bounds = array<i64: 32, 128>}, {pipeline_mode = #tpu.pipeline_mode<synchronous>, transform_indices = @transform_2, window_bounds = array<i64: 128, 32>}, {pipeline_mode = #tpu.pipeline_mode<synchronous>, transform_indices = @transform_3, window_bounds = array<i64: 1, 32>}, {transform_indices = @transform_4, window_bounds = array<i64: 16, 32>}]} {
    %c0 = arith.constant 0 : index
    %c0_0 = arith.constant 0 : index
    %0 = vector.load %arg1[%c0, %c0_0] : memref<16x32xf32, #tpu.memory_space<vmem>>, vector<16x32xf32>
    %c0_1 = arith.constant 0 : index
    %c0_2 = arith.constant 0 : index
    %1 = vector.load %arg2[%c0_1, %c0_2] : memref<32x128xf32, #tpu.memory_space<vmem>>, vector<32x128xf32>
    %cst = arith.constant dense<0.000000e+00> : vector<16x128xf32>
    %2 = tpu.matmul %0, %1, %cst {dimension_numbers = #tpu.dot_dimension_numbers<[1], [0], [0], [1], [0, 0, 1, 1], [], []>} : vector<16x32xf32>, vector<32x128xf32>, vector<16x128xf32> -> vector<16x128xf32>
    %c0_3 = arith.constant 0 : index
    %c0_4 = arith.constant 0 : index
    %3 = vector.load %arg3[%c0_3, %c0_4] : memref<128x32xf32, #tpu.memory_space<vmem>>, vector<128x32xf32>
    %cst_5 = arith.constant dense<0.000000e+00> : vector<16x32xf32>
    %4 = tpu.matmul %2, %3, %cst_5 {dimension_numbers = #tpu.dot_dimension_numbers<[1], [0], [0], [1], [0, 0, 1, 1], [], []>} : vector<16x128xf32>, vector<128x32xf32>, vector<16x32xf32> -> vector<16x32xf32>
    %c0_6 = arith.constant 0 : index
    %c0_7 = arith.constant 0 : index
    %5 = vector.load %arg4[%c0_6, %c0_7] : memref<1x32xf32, #tpu.memory_space<vmem>>, vector<1x32xf32>
    %6 = vector.broadcast %5 : vector<1x32xf32> to vector<16x32xf32>
    %7 = arith.addf %4, %6 : vector<16x32xf32>
    %8 = arith.addf %7, %0 : vector<16x32xf32>
    %c0_8 = arith.constant 0 : index
    %c0_9 = arith.constant 0 : index
    %9 = vector.load %arg5[%c0_8, %c0_9] : memref<16x32xf32, #tpu.memory_space<vmem>>, vector<16x32xf32>
    tpu.vector_store %arg5[%c0_8, %c0_9], %8 {strides = array<i32>} : memref<16x32xf32, #tpu.memory_space<vmem>>, vector<16x32xf32>,
    return
  }
  func.func @transform_0(%arg0: i32) -> (i32, i32) {
    %c0_i32 = arith.constant 0 : i32
    %c0_i32_0 = arith.constant 0 : i32
    return %arg0, %c0_i32 : i32, i32
  }
  func.func @transform_1(%arg0: i32) -> (i32, i32) {
    %c0_i32 = arith.constant 0 : i32
    %c0_i32_0 = arith.constant 0 : i32
    %c0_i32_1 = arith.constant 0 : i32
    return %c0_i32, %c0_i32_0 : i32, i32
  }
  func.func @transform_2(%arg0: i32) -> (i32, i32) {
    %c0_i32 = arith.constant 0 : i32
    %c0_i32_0 = arith.constant 0 : i32
    %c0_i32_1 = arith.constant 0 : i32
    return %c0_i32, %c0_i32_0 : i32, i32
  }
  func.func @transform_3(%arg0: i32) -> (i32, i32) {
    %c0_i32 = arith.constant 0 : i32
    %c0_i32_0 = arith.constant 0 : i32
    %c0_i32_1 = arith.constant 0 : i32
    return %c0_i32, %c0_i32_0 : i32, i32
  }
  func.func @transform_4(%arg0: i32) -> (i32, i32) {
    %c0_i32 = arith.constant 0 : i32
    %c0_i32_0 = arith.constant 0 : i32
    return %arg0, %c0_i32 : i32, i32
  }
}

module attributes {stable_mosaic.version = 11 : i64} {
  func.func @arc_adapter_kernel(%arg0: i32, %arg1: memref<16x32xf32, #tpu.memory_space<vmem>>, %arg2: memref<32x128xf32, #tpu.memory_space<vmem>>, %arg3: memref<128x32xf32, #tpu.memory_space<vmem>>, %arg4: memref<1x32xf32, #tpu.memory_space<vmem>>, %arg5: memref<16x32xf32, #tpu.memory_space<vmem>>) attributes {dimension_semantics = [#tpu.dimension_semantics<parallel>], iteration_bounds = array<i64: 1>, scalar_prefetch = 0 : i64, scratch_operands = 0 : i64, tpu.core_type = #tpu.core_type<tc>, window_params = [{transform_indices = @transform_0, window_bounds = array<i64: 16, 32>}, {pipeline_mode = #tpu.pipeline_mode<synchronous>, transform_indices = @transform_1, window_bounds = array<i64: 32, 128>}, {pipeline_mode = #tpu.pipeline_mode<synchronous>, transform_indices = @transform_2, window_bounds = array<i64: 128, 32>}, {pipeline_mode = #tpu.pipeline_mode<synchronous>, transform_indices = @transform_3, window_bounds = array<i64: 1, 32>}, {transform_indices = @transform_4, window_bounds = array<i64: 16, 32>}]} {
    %c0 = arith.constant 0 : index
    %c0_0 = arith.constant 0 : index
    %0 = vector.load %arg1[%c0, %c0_0] : memref<16x32xf32, #tpu.memory_space<vmem>>, vector<16x32xf32>
    %c0_1 = arith.constant 0 : index
    %c0_2 = arith.constant 0 : index
    %1 = vector.load %arg2[%c0_1, %c0_2] : memref<32x128xf32, #tpu.memory_space<vmem>>, vector<32x128xf32>
    %cst = arith.constant dense<0.000000e+00> : vector<16x128xf32>
    %2 = tpu.matmul %0, %1, %cst {dimension_numbers = #tpu.dot_dimension_numbers<[1], [0], [0], [1], [0, 0, 1, 1], [], []>} : vector<16x32xf32>, vector<32x128xf32>, vector<16x128xf32> -> vector<16x128xf32>
    %c0_3 = arith.constant 0 : index
    %c0_4 = arith.constant 0 : index
    %3 = vector.load %arg3[%c0_3, %c0_4] : memref<128x32xf32, #tpu.memory_space<vmem>>, vector<128x32xf32>
    %cst_5 = arith.constant dense<0.000000e+00> : vector<16x32xf32>
    %4 = tpu.matmul %2, %3, %cst_5 {dimension_numbers = #tpu.dot_dimension_numbers<[1], [0], [0], [1], [0, 0, 1, 1], [], []>} : vector<16x128xf32>, vector<128x32xf32>, vector<16x32xf32> -> vector<16x32xf32>
    %c0_6 = arith.constant 0 : index
    %c0_7 = arith.constant 0 : index
    %5 = vector.load %arg4[%c0_6, %c0_7] : memref<1x32xf32, #tpu.memory_space<vmem>>, vector<1x32xf32>
    %6 = vector.broadcast %5 : vector<1x32xf32> to vector<16x32xf32>
    %7 = arith.addf %4, %6 : vector<16x32xf32>
    %8 = arith.addf %7, %0 : vector<16x32xf32>
    %c0_8 = arith.constant 0 : index
    %c0_9 = arith.constant 0 : index
    %9 = vector.load %arg5[%c0_8, %c0_9] : memref<16x32xf32, #tpu.memory_space<vmem>>, vector<16x32xf32>
    tpu.vector_store %arg5[%c0_8, %c0_9], %8 {strides = array<i32>} : memref<16x32xf32, #tpu.memory_space<vmem>>, vector<16x32xf32>,
    return
  }
  func.func @transform_0(%arg0: i32) -> (i32, i32) {
    %c0_i32 = arith.constant 0 : i32
    %c0_i32_0 = arith.constant 0 : i32
    return %arg0, %c0_i32 : i32, i32
  }
  func.func @transform_1(%arg0: i32) -> (i32, i32) {
    %c0_i32 = arith.constant 0 : i32
    %c0_i32_0 = arith.constant 0 : i32
    %c0_i32_1 = arith.constant 0 : i32
    return %c0_i32, %c0_i32_0 : i32, i32
  }
  func.func @transform_2(%arg0: i32) -> (i32, i32) {
    %c0_i32 = arith.constant 0 : i32
    %c0_i32_0 = arith.constant 0 : i32
    %c0_i32_1 = arith.constant 0 : i32
    return %c0_i32, %c0_i32_0 : i32, i32
  }
  func.func @transform_3(%arg0: i32) -> (i32, i32) {
    %c0_i32 = arith.constant 0 : i32
    %c0_i32_0 = arith.constant 0 : i32
    %c0_i32_1 = arith.constant 0 : i32
    return %c0_i32, %c0_i32_0 : i32, i32
  }
  func.func @transform_4(%arg0: i32) -> (i32, i32) {
    %c0_i32 = arith.constant 0 : i32
    %c0_i32_0 = arith.constant 0 : i32
    return %arg0, %c0_i32 : i32, i32
  }
}

</mosaic_0001>

<bundles_post_ra>
// kernel: tpu_custom_call.1
= control target key start
LH: loop header
LB: loop body
LE: loop exit
PB: predicated region body
PF: predicated region fallthrough
CT: control target
= control target key end

     0   :  { %vm24_vm0 = vcmask 261120   ;;  %s430_s0 = inlined_call_operand.vmem [shape: f32[16,32], index: 0, kind: input, shape index: {}]   ;;  %s431_s1 = inlined_call_operand.vmem [shape: f32[32,128], index: 1, kind: input, shape index: {}]   ;;  %s432_s2 = inlined_call_operand.vmem [shape: f32[128,32], index: 2, kind: input, shape index: {}]   ;;  %s433_s3 = inlined_call_operand.vmem [shape: f32[1,32], index: 3, kind: input, shape index: {}]   ;;  %s434_s4 = inlined_call_operand.hbm [shape: f32[16,32], index: 4, kind: output, shape index: {}]  }
   0x1   :  { %v23_v0 = vld [vmem:[%s431_s1 + $0x18] sm:$0xff]  ;;  %v22_v1 = vld [vmem:[%s431_s1 + $0x10] sm:$0xff]  ;;  %v359_v2 = vld [vmem:[%s430_s0] sm:$0xff] }
   0x2   :  { %251 = vmatprep.subr.mxu0 %v23_v0  ;;  %v21_v3 = vld [vmem:[%s431_s1 + $0x8] sm:$0xff]  ;;  %259 = vmatprep.mubr.msk.f32.mxu0 %vm24_vm0, %v359_v2  ;;  %v121_v4 = vld [vmem:[%s432_s2 + $0x78] sm:$0xff]  ;;  %v120_v5 = vld [vmem:[%s432_s2 + $0x70] sm:$0xff] }
   0x3   :  { %252 = vmatpush3.msra.mxu0 %v23_v0  ;;  %262 = vmatprep.subr.mxu1 %v121_v4  ;;  %v20_v6 = vld [vmem:[%s431_s1] sm:$0xff]  ;;  %v119_v7 = vld [vmem:[%s432_s2 + $0x68] sm:$0xff] }
   0x4   :  { %253 = vmatprep.subr.mxu0 %v22_v1  ;;  %263 = vmatpush3.msra.mxu1 %v121_v4  ;;  %v19_v8 = vld [vmem:[%s430_s0 + $0x8] sm:$0xff]  ;;  %v118_v9 = vld [vmem:[%s432_s2 + $0x60] sm:$0xff] }
   0x5   :  { %254 = vmatpush3.msra.mxu0 %v22_v1  ;;  %264 = vmatprep.subr.mxu1 %v120_v5 }
   0x6   :  { %255 = vmatprep.subr.mxu0 %v21_v3  ;;  %265 = vmatpush3.msra.mxu1 %v120_v5 }
   0x7   :  { %256 = vmatpush3.msra.mxu0 %v21_v3 }
   0x8   :  { %9 = vsyncpa [#allocation3], 0  ;;  %257 = vmatprep.subr.mxu0 %v20_v6  ;;  %266 = vmatprep.subr.mxu1 %v119_v7  ;;  %v117_v10 = vld [vmem:[%s432_s2 + $0x58] sm:$0xff]  ;;  %v116_v11 = vld [vmem:[%s432_s2 + $0x50] sm:$0xff]  ;;  %s322_s7 = smov [#allocation2]  }
   0x9   :  { %258 = vmatpush3.msra.mxu0 %v20_v6  ;;  %267 = vmatpush3.msra.mxu1 %v119_v7  ;;  %v115_v12 = vld [vmem:[%s432_s2 + $0x48] sm:$0xff]  ;;  %v114_v13 = vld [vmem:[%s432_s2 + $0x40] sm:$0xff]  ;;  %v113_v14 = vld [vmem:[%s432_s2 + $0x38] sm:$0xff]  ;;  %s213_s8 = sshll.u32 %s322_s7, 4  ;;  %s214_s8 = int_to_ptr.vmem [resolvable:$true] %s213_s8 }
   0xa   :  { %260 = vmatmul.mubr.msk.f32.vlgmr.msra.gmra.mxu0 %vm24_vm0, %v19_v8  ;;  %268 = vmatprep.subr.mxu1 %v118_v9  ;;  %v112_v15 = vld [vmem:[%s432_s2 + $0x30] sm:$0xff]  ;;  %v111_v16 = vld [vmem:[%s432_s2 + $0x28] sm:$0xff]  ;;  %v110_v17 = vld [vmem:[%s432_s2 + $0x20] sm:$0xff]  ;;  %p305_p1 = scmp.lt.s32.totalorder %s214_s8, %s214_s8 }
   0xb   :  { %269 = vmatpush3.msra.mxu1 %v118_v9  ;;  %v109_v18 = vld [vmem:[%s432_s2 + $0x18] sm:$0xff]  ;;  %v108_v19 = vld [vmem:[%s432_s2 + $0x10] sm:$0xff]  ;;  %v107_v20 = vld [vmem:[%s432_s2 + $0x8] sm:$0xff] }
   0xc   :  { %270 = vmatprep.subr.mxu1 %v117_v10  ;;  %v106_v21 = vld [vmem:[%s432_s2] sm:$0xff]  ;;  %s300_s2 = scalar_lea.vmem %s214_s8, 256 }
   0xd   :  { %271 = vmatpush3.msra.mxu1 %v117_v10  ;;  %v226_v24 = vld [vmem:[%s433_s3] ss:$0 sm:$0xff]  ;;  %p301_p0 = scmp.ne.s32.totalorder %s214_s8, %s300_s2  ;;  %p306_p2 = scmp.lt.s32.totalorder %s300_s2, %s300_s2 }
   0xe   :  { %272 = vmatprep.subr.mxu1 %v116_v11 }
   0xf   :  { %273 = vmatpush3.msra.mxu1 %v116_v11  ;;  %p307_p3 = por %p306_p2, %p305_p1 }
  0x10   :  { %274 = vmatprep.subr.mxu1 %v115_v12 }
  0x11   :  { %275 = vmatpush3.msra.mxu1 %v115_v12  ;;  %p308_p4 = pnand %p307_p3, %p301_p0 }
  0x12   :  { %276 = vmatprep.subr.mxu1 %v114_v13 }
  0x13   :  { %277 = vmatpush3.msra.mxu1 %v114_v13 }
  0x14   :  { %278 = vmatprep.subr.mxu1 %v113_v14 }
  0x15   :  { %279 = vmatpush3.msra.mxu1 %v113_v14 }
  0x16   :  { %280 = vmatprep.subr.mxu1 %v112_v15 }
  0x17   :  { %281 = vmatpush3.msra.mxu1 %v112_v15 }
  0x18   :  { %282 = vmatprep.subr.mxu1 %v111_v16 }
  0x19   :  { %283 = vmatpush3.msra.mxu1 %v111_v16 }
  0x1a   :  { %284 = vmatprep.subr.mxu1 %v110_v17 }
  0x1b   :  { %285 = vmatpush3.msra.mxu1 %v110_v17 }
  0x1c   :  { %286 = vmatprep.subr.mxu1 %v109_v18 }
  0x1d   :  { %287 = vmatpush3.msra.mxu1 %v109_v18 }
  0x1e   :  { %288 = vmatprep.subr.mxu1 %v108_v19 }
  0x1f   :  { %289 = vmatpush3.msra.mxu1 %v108_v19 }
  0x20   :  { %290 = vmatprep.subr.mxu1 %v107_v20 }
  0x21   :  { %291 = vmatpush3.msra.mxu1 %v107_v20 }
  0x22   :  { %292 = vmatprep.subr.mxu1 %v106_v21 }
  0x23   :  { %293 = vmatpush3.msra.mxu1 %v106_v21 }
  0xca   :  { %v261_v22 = vpop.f32.mrf.mxu0 }
  0xcc   :  { %v97_v23 = vpop.f32.mrf.mxu0 }
  0xcd   :  { %294 = vmatprep.mubr.f32.mxu1 %v97_v23 }
  0xce   :  { %295 = vmatmul.mubr.f32.vlgmr.msra.gmra.mxu1 %v261_v22 }
 0x18e   :  { %v296_v25 = vpop.f32.mrf.mxu1 }
 0x18f   :  { %v201_v26 = vadd.f32 %v296_v25, %v226_v24 }
 0x190   :  { %v195_v27 = vpop.f32.mrf.mxu1 }
 0x191   :  { %v205_v28 = vadd.f32 %v201_v26, %v19_v8  ;;  %v196_v29 = vadd.f32 %v226_v24, %v195_v27 }
 0x193   :  { %207 = vst.msk [vmem:[#allocation2 + $0x8] sm:$0xff] %vm24_vm0, %v205_v28  ;;  %v204_v30 = vadd.f32 %v196_v29, %v359_v2 }
 0x195   :  { %206 = vst.msk [vmem:[#allocation2] sm:$0xff] %vm24_vm0, %v204_v30 }
 0x196   :  { %311 = shalt.err (!%p308_p4)
}
 0x197   :  { %s323_s3 = smov 128   ;;  %s324_s1 = smov 8  }
 0x198   :  { %219 = dma.vmem_to_hbm [thread:$0]  %s214_s8, 256, %s434_s4, [#allocation3], %s323_s3, %s323_s3, %s324_s1  }
 0x199   :  { %320 = dma.done.wait [#allocation3], 256  }
 0x19a   :  { %321 = vsyncadd [#allocation3], 4294967040 }
 0x19b   :  { %223 = vsyncpa [#allocation3], 1 }

// kernel: tpu_custom_call.1
= control target key start
LH: loop header
LB: loop body
LE: loop exit
PB: predicated region body
PF: predicated region fallthrough
CT: control target
= control target key end

     0   :  { %vm24_vm0 = vcmask 261120   ;;  %s430_s0 = inlined_call_operand.vmem [shape: f32[16,32], index: 0, kind: input, shape index: {}]   ;;  %s431_s1 = inlined_call_operand.vmem [shape: f32[32,128], index: 1, kind: input, shape index: {}]   ;;  %s432_s2 = inlined_call_operand.vmem [shape: f32[128,32], index: 2, kind: input, shape index: {}]   ;;  %s433_s3 = inlined_call_operand.vmem [shape: f32[1,32], index: 3, kind: input, shape index: {}]   ;;  %s434_s4 = inlined_call_operand.hbm [shape: f32[16,32], index: 4, kind: output, shape index: {}]  }
   0x1   :  { %v23_v0 = vld [vmem:[%s431_s1 + $0x18] sm:$0xff]  ;;  %v22_v1 = vld [vmem:[%s431_s1 + $0x10] sm:$0xff]  ;;  %v359_v2 = vld [vmem:[%s430_s0] sm:$0xff] }
   0x2   :  { %251 = vmatprep.subr.mxu0 %v23_v0  ;;  %v21_v3 = vld [vmem:[%s431_s1 + $0x8] sm:$0xff]  ;;  %259 = vmatprep.mubr.msk.f32.mxu0 %vm24_vm0, %v359_v2  ;;  %v121_v4 = vld [vmem:[%s432_s2 + $0x78] sm:$0xff]  ;;  %v120_v5 = vld [vmem:[%s432_s2 + $0x70] sm:$0xff] }
   0x3   :  { %252 = vmatpush3.msra.mxu0 %v23_v0  ;;  %262 = vmatprep.subr.mxu1 %v121_v4  ;;  %v20_v6 = vld [vmem:[%s431_s1] sm:$0xff]  ;;  %v119_v7 = vld [vmem:[%s432_s2 + $0x68] sm:$0xff] }
   0x4   :  { %253 = vmatprep.subr.mxu0 %v22_v1  ;;  %263 = vmatpush3.msra.mxu1 %v121_v4  ;;  %v19_v8 = vld [vmem:[%s430_s0 + $0x8] sm:$0xff]  ;;  %v118_v9 = vld [vmem:[%s432_s2 + $0x60] sm:$0xff] }
   0x5   :  { %254 = vmatpush3.msra.mxu0 %v22_v1  ;;  %264 = vmatprep.subr.mxu1 %v120_v5 }
   0x6   :  { %255 = vmatprep.subr.mxu0 %v21_v3  ;;  %265 = vmatpush3.msra.mxu1 %v120_v5 }
   0x7   :  { %256 = vmatpush3.msra.mxu0 %v21_v3 }
   0x8   :  { %9 = vsyncpa [#allocation3], 0  ;;  %257 = vmatprep.subr.mxu0 %v20_v6  ;;  %266 = vmatprep.subr.mxu1 %v119_v7  ;;  %v117_v10 = vld [vmem:[%s432_s2 + $0x58] sm:$0xff]  ;;  %v116_v11 = vld [vmem:[%s432_s2 + $0x50] sm:$0xff]  ;;  %s322_s7 = smov [#allocation2]  }
   0x9   :  { %258 = vmatpush3.msra.mxu0 %v20_v6  ;;  %267 = vmatpush3.msra.mxu1 %v119_v7  ;;  %v115_v12 = vld [vmem:[%s432_s2 + $0x48] sm:$0xff]  ;;  %v114_v13 = vld [vmem:[%s432_s2 + $0x40] sm:$0xff]  ;;  %v113_v14 = vld [vmem:[%s432_s2 + $0x38] sm:$0xff]  ;;  %s213_s8 = sshll.u32 %s322_s7, 4  ;;  %s214_s8 = int_to_ptr.vmem [resolvable:$true] %s213_s8 }
   0xa   :  { %260 = vmatmul.mubr.msk.f32.vlgmr.msra.gmra.mxu0 %vm24_vm0, %v19_v8  ;;  %268 = vmatprep.subr.mxu1 %v118_v9  ;;  %v112_v15 = vld [vmem:[%s432_s2 + $0x30] sm:$0xff]  ;;  %v111_v16 = vld [vmem:[%s432_s2 + $0x28] sm:$0xff]  ;;  %v110_v17 = vld [vmem:[%s432_s2 + $0x20] sm:$0xff]  ;;  %p305_p1 = scmp.lt.s32.totalorder %s214_s8, %s214_s8 }
   0xb   :  { %269 = vmatpush3.msra.mxu1 %v118_v9  ;;  %v109_v18 = vld [vmem:[%s432_s2 + $0x18] sm:$0xff]  ;;  %v108_v19 = vld [vmem:[%s432_s2 + $0x10] sm:$0xff]  ;;  %v107_v20 = vld [vmem:[%s432_s2 + $0x8] sm:$0xff] }
   0xc   :  { %270 = vmatprep.subr.mxu1 %v117_v10  ;;  %v106_v21 = vld [vmem:[%s432_s2] sm:$0xff]  ;;  %s300_s2 = scalar_lea.vmem %s214_s8, 256 }
   0xd   :  { %271 = vmatpush3.msra.mxu1 %v117_v10  ;;  %v226_v24 = vld [vmem:[%s433_s3] ss:$0 sm:$0xff]  ;;  %p301_p0 = scmp.ne.s32.totalorder %s214_s8, %s300_s2  ;;  %p306_p2 = scmp.lt.s32.totalorder %s300_s2, %s300_s2 }
   0xe   :  { %272 = vmatprep.subr.mxu1 %v116_v11 }
   0xf   :  { %273 = vmatpush3.msra.mxu1 %v116_v11  ;;  %p307_p3 = por %p306_p2, %p305_p1 }
  0x10   :  { %274 = vmatprep.subr.mxu1 %v115_v12 }
  0x11   :  { %275 = vmatpush3.msra.mxu1 %v115_v12  ;;  %p308_p4 = pnand %p307_p3, %p301_p0 }
  0x12   :  { %276 = vmatprep.subr.mxu1 %v114_v13 }
  0x13   :  { %277 = vmatpush3.msra.mxu1 %v114_v13 }
  0x14   :  { %278 = vmatprep.subr.mxu1 %v113_v14 }
  0x15   :  { %279 = vmatpush3.msra.mxu1 %v113_v14 }
  0x16   :  { %280 = vmatprep.subr.mxu1 %v112_v15 }
  0x17   :  { %281 = vmatpush3.msra.mxu1 %v112_v15 }
  0x18   :  { %282 = vmatprep.subr.mxu1 %v111_v16 }
  0x19   :  { %283 = vmatpush3.msra.mxu1 %v111_v16 }
  0x1a   :  { %284 = vmatprep.subr.mxu1 %v110_v17 }
  0x1b   :  { %285 = vmatpush3.msra.mxu1 %v110_v17 }
  0x1c   :  { %286 = vmatprep.subr.mxu1 %v109_v18 }
  0x1d   :  { %287 = vmatpush3.msra.mxu1 %v109_v18 }
  0x1e   :  { %288 = vmatprep.subr.mxu1 %v108_v19 }
  0x1f   :  { %289 = vmatpush3.msra.mxu1 %v108_v19 }
  0x20   :  { %290 = vmatprep.subr.mxu1 %v107_v20 }
  0x21   :  { %291 = vmatpush3.msra.mxu1 %v107_v20 }
  0x22   :  { %292 = vmatprep.subr.mxu1 %v106_v21 }
  0x23   :  { %293 = vmatpush3.msra.mxu1 %v106_v21 }
  0xca   :  { %v261_v22 = vpop.f32.mrf.mxu0 }
  0xcc   :  { %v97_v23 = vpop.f32.mrf.mxu0 }
  0xcd   :  { %294 = vmatprep.mubr.f32.mxu1 %v97_v23 }
  0xce   :  { %295 = vmatmul.mubr.f32.vlgmr.msra.gmra.mxu1 %v261_v22 }
 0x18e   :  { %v296_v25 = vpop.f32.mrf.mxu1 }
 0x18f   :  { %v201_v26 = vadd.f32 %v296_v25, %v226_v24 }
 0x190   :  { %v195_v27 = vpop.f32.mrf.mxu1 }
 0x191   :  { %v205_v28 = vadd.f32 %v201_v26, %v19_v8  ;;  %v196_v29 = vadd.f32 %v226_v24, %v195_v27 }
 0x193   :  { %207 = vst.msk [vmem:[#allocation2 + $0x8] sm:$0xff] %vm24_vm0, %v205_v28  ;;  %v204_v30 = vadd.f32 %v196_v29, %v359_v2 }
 0x195   :  { %206 = vst.msk [vmem:[#allocation2] sm:$0xff] %vm24_vm0, %v204_v30 }
 0x196   :  { %311 = shalt.err (!%p308_p4)
}
 0x197   :  { %s323_s3 = smov 128   ;;  %s324_s1 = smov 8  }
 0x198   :  { %219 = dma.vmem_to_hbm [thread:$0]  %s214_s8, 256, %s434_s4, [#allocation3], %s323_s3, %s323_s3, %s324_s1  }
 0x199   :  { %320 = dma.done.wait [#allocation3], 256  }
 0x19a   :  { %321 = vsyncadd [#allocation3], 4294967040 }
 0x19b   :  { %223 = vsyncpa [#allocation3], 1 }

</bundles_post_ra>
